<compile_context>
chip_gen: v5e
topology: v5e:2x2
jax: 0.10.0
libtpu: 0.0.40
codegen_flags: <defaults>
</compile_context>

<pallas_src>
import functools

import jax
import jax.numpy as jnp
from jax.experimental import pallas as pl
from jax.experimental.pallas import tpu as pltpu


def _round_up(v, m):
    return (v + m - 1) // m * m


def _rfn_kernel(x_ref, w1_ref, b1_ref, wm_ref, bm_ref, w2_ref, b2_ref, o_ref):
    """Fused reverse_net + forward_net forward for one batch tile.

    x_ref: [TB, d_in]; weights pre-transposed to [in, out] and the
    fc2r -> fc1f pair pre-folded into (wm, bm).  3 MXU matmuls + 2 ReLUs,
    f32 accumulation.
    """
    x = x_ref[...]

    h1 = jnp.dot(x, w1_ref[...], preferred_element_type=jnp.float32) + b1_ref[...]
    h1 = jnp.maximum(h1, 0.0)                                # reverse_net ReLU

    h2 = jnp.dot(h1, wm_ref[...], preferred_element_type=jnp.float32) + bm_ref[...]
    h2 = jnp.maximum(h2, 0.0)                                # forward_net ReLU

    out = jnp.dot(h2, w2_ref[...], preferred_element_type=jnp.float32) + b2_ref[...]
    o_ref[...] = out.astype(o_ref.dtype)


def prepare_params(params):
    """One-time weight prep (call once at parameter-load time, NOT per forward).

    Folds the two back-to-back linears that have no activation between them
    (reverse.fc2 followed by the frozen forward.fc1) into a single affine:
        W_mid = W2r @ W1f,   b_mid = b2r @ W1f + b1f
    Exact algebraically (accumulation order differs from the unfolded net).
    """
    w_mid = params["w2r"] @ params["w1f"]                    # [hidden_r, hidden_f]
    b_mid = params["b2r"] @ params["w1f"] + params["b1f"]    # [1, hidden_f]
    return dict(w1=params["w1r"], b1=params["b1r"],
                wm=w_mid, bm=b_mid,
                w2=params["w2f"], b2=params["b2f"])


def _pick_tile(b_pad, tb):
    """Batch tile: multiple of 8 sublanes, <= tb, and <= ceil(B/2) so the
    'parallel' grid axis has >=2 steps when B >= 16 (v7x dual-TC)."""
    half = _round_up(pl.cdiv(b_pad, 2), 8)
    t = min(tb, half, b_pad)
    return max(8, _round_up(t, 8))


@functools.partial(jax.jit, static_argnames=("tb",))
def reverse_forward_net(x, prep, *, tb=2048):
    """x: [B, d_in] float32.  prep: output of prepare_params()."""
    B, d_in = x.shape
    hidden_r = prep["w1"].shape[1]
    hidden_f = prep["wm"].shape[1]
    d_out = prep["w2"].shape[1]

    # Only a tiny sublane pad (<= 7 rows) when B is not a multiple of 8;
    # feature dims stay unpadded in HBM.
    B_pad = _round_up(B, 8)
    xp = jnp.pad(x, ((0, B_pad - B), (0, 0))) if B_pad != B else x

    TB = _pick_tile(B_pad, tb)
    grid = (pl.cdiv(B_pad, TB),)      # partial last tile masked by Pallas

    const = lambda i: (0, 0)          # weights/biases resident across grid steps

    # Cost hint reflects what is actually executed / DMA'd.
    flops = 2 * B_pad * (d_in * hidden_r + hidden_r * hidden_f + hidden_f * d_out)
    bytes_accessed = 4 * (B_pad * (d_in + d_out)
                          + sum(int(v.size) for v in prep.values()))

    out = pl.pallas_call(
        _rfn_kernel,
        out_shape=jax.ShapeDtypeStruct((B_pad, d_out), jnp.float32),
        grid=grid,
        in_specs=[
            pl.BlockSpec((TB, d_in), lambda i: (i, 0)),       # x tile (pipelined)
            pl.BlockSpec((d_in, hidden_r), const),            # W1  (reverse.fc1)
            pl.BlockSpec((1, hidden_r), const),               # b1
            pl.BlockSpec((hidden_r, hidden_f), const),        # W_mid (fc2r @ fc1f)
            pl.BlockSpec((1, hidden_f), const),               # b_mid
            pl.BlockSpec((hidden_f, d_out), const),           # W2  (forward.fc2)
            pl.BlockSpec((1, d_out), const),                  # b2
        ],
        out_specs=pl.BlockSpec((TB, d_out), lambda i: (i, 0)),
        compiler_params=pltpu.CompilerParams(
            dimension_semantics=("parallel",),                # v7x dual-TC sharding
            vmem_limit_bytes=32 * 1024 * 1024,                # safe on v5e/v6e/v7x
        ),
        cost_estimate=pl.CostEstimate(
            flops=flops, transcendentals=0, bytes_accessed=bytes_accessed),
    )(xp, prep["w1"], prep["b1"], prep["wm"], prep["bm"], prep["w2"], prep["b2"])

    return out[:B] if B_pad != B else out


def init_params(key, d_in=16, hidden=32, d_out=16):
    """Deterministic synthetic params.  PyTorch Linear stores W as [out, in];
    transpose once (glue) so the kernel does x @ W.
    # TODO(synk): torch.load(forward_wt_path) + requires_grad=False has no
    # runtime Pallas equivalent; frozen forward_net weights are plain constants.
    """
    ks = jax.random.split(key, 8)
    scale = 0.1

    def lin(kw, kb, o, i):
        w = scale * jax.random.normal(kw, (o, i), jnp.float32)   # torch layout
        b = scale * jax.random.normal(kb, (o,), jnp.float32)
        return w.T, b.reshape(1, o)                              # kernel layout

    w1r, b1r = lin(ks[0], ks[1], hidden, d_in)    # reverse_net.fc1
    w2r, b2r = lin(ks[2], ks[3], d_in, hidden)    # reverse_net.fc2
    w1f, b1f = lin(ks[4], ks[5], hidden, d_in)    # forward_net.fc1 (frozen)
    w2f, b2f = lin(ks[6], ks[7], d_out, hidden)   # forward_net.fc2 (frozen)
    return dict(w1r=w1r, b1r=b1r, w2r=w2r, b2r=b2r,
                w1f=w1f, b1f=b1f, w2f=w2f, b2f=b2f)


def reference(x, p):
    """Pure-JAX reference of the original (un-folded) composed forward pass."""
    h = jnp.maximum(x @ p["w1r"] + p["b1r"], 0.0)
    xr = h @ p["w2r"] + p["b2r"]
    h2 = jnp.maximum(xr @ p["w1f"] + p["b1f"], 0.0)
    return h2 @ p["w2f"] + p["b2f"]


if __name__ == "__main__":
    key = jax.random.PRNGKey(0)
    k_x, k_p = jax.random.split(key)

    B, D_IN, HIDDEN, D_OUT = 8, 16, 32, 16
    x = jax.random.normal(k_x, (B, D_IN), jnp.float32)
    params = init_params(k_p, d_in=D_IN, hidden=HIDDEN, d_out=D_OUT)
    prep = prepare_params(params)           # one-time fold + layout prep

    out = reverse_forward_net(x, prep)
    out = jax.block_until_ready(out)

    ref = reference(x, params)
    assert out.shape == (B, D_OUT)
    assert jnp.allclose(out, ref, atol=1e-5, rtol=1e-4), (
        float(jnp.max(jnp.abs(out - ref))))

    print("KERNEL_OK")
</pallas_src>

<mosaic_0001>
module attributes {stable_mosaic.version = 11 : i64} {
  func.func @_rfn_kernel(%arg0: i32, %arg1: memref<8x16xf32, #tpu.memory_space<vmem>>, %arg2: memref<16x32xf32, #tpu.memory_space<vmem>>, %arg3: memref<1x32xf32, #tpu.memory_space<vmem>>, %arg4: memref<32x32xf32, #tpu.memory_space<vmem>>, %arg5: memref<1x32xf32, #tpu.memory_space<vmem>>, %arg6: memref<32x16xf32, #tpu.memory_space<vmem>>, %arg7: memref<1x16xf32, #tpu.memory_space<vmem>>, %arg8: memref<8x16xf32, #tpu.memory_space<vmem>>) attributes {dimension_semantics = [#tpu.dimension_semantics<parallel>], iteration_bounds = array<i64: 1>, scalar_prefetch = 0 : i64, scratch_operands = 0 : i64, tpu.core_type = #tpu.core_type<tc>, window_params = [{transform_indices = @transform_0, window_bounds = array<i64: 8, 16>}, {pipeline_mode = #tpu.pipeline_mode<synchronous>, transform_indices = @transform_1, window_bounds = array<i64: 16, 32>}, {pipeline_mode = #tpu.pipeline_mode<synchronous>, transform_indices = @transform_2, window_bounds = array<i64: 1, 32>}, {pipeline_mode = #tpu.pipeline_mode<synchronous>, transform_indices = @transform_3, window_bounds = array<i64: 32, 32>}, {pipeline_mode = #tpu.pipeline_mode<synchronous>, transform_indices = @transform_4, window_bounds = array<i64: 1, 32>}, {pipeline_mode = #tpu.pipeline_mode<synchronous>, transform_indices = @transform_5, window_bounds = array<i64: 32, 16>}, {pipeline_mode = #tpu.pipeline_mode<synchronous>, transform_indices = @transform_6, window_bounds = array<i64: 1, 16>}, {transform_indices = @transform_7, window_bounds = array<i64: 8, 16>}]} {
    %c0 = arith.constant 0 : index
    %c0_0 = arith.constant 0 : index
    %0 = vector.load %arg1[%c0, %c0_0] : memref<8x16xf32, #tpu.memory_space<vmem>>, vector<8x16xf32>
    %c0_1 = arith.constant 0 : index
    %c0_2 = arith.constant 0 : index
    %1 = vector.load %arg2[%c0_1, %c0_2] : memref<16x32xf32, #tpu.memory_space<vmem>>, vector<16x32xf32>
    %cst = arith.constant dense<0.000000e+00> : vector<8x32xf32>
    %2 = tpu.matmul %0, %1, %cst {dimension_numbers = #tpu.dot_dimension_numbers<[1], [0], [0], [1], [0, 0, 1, 1], [], []>} : vector<8x16xf32>, vector<16x32xf32>, vector<8x32xf32> -> vector<8x32xf32>
    %c0_3 = arith.constant 0 : index
    %c0_4 = arith.constant 0 : index
    %3 = vector.load %arg3[%c0_3, %c0_4] : memref<1x32xf32, #tpu.memory_space<vmem>>, vector<1x32xf32>
    %4 = vector.broadcast %3 : vector<1x32xf32> to vector<8x32xf32>
    %5 = arith.addf %2, %4 : vector<8x32xf32>
    %cst_5 = arith.constant 0.000000e+00 : f32
    %6 = vector.broadcast %cst_5 : f32 to vector<8x32xf32>
    %7 = arith.maximumf %5, %6 : vector<8x32xf32>
    %c0_6 = arith.constant 0 : index
    %c0_7 = arith.constant 0 : index
    %8 = vector.load %arg4[%c0_6, %c0_7] : memref<32x32xf32, #tpu.memory_space<vmem>>, vector<32x32xf32>
    %cst_8 = arith.constant dense<0.000000e+00> : vector<8x32xf32>
    %9 = tpu.matmul %7, %8, %cst_8 {dimension_numbers = #tpu.dot_dimension_numbers<[1], [0], [0], [1], [0, 0, 1, 1], [], []>} : vector<8x32xf32>, vector<32x32xf32>, vector<8x32xf32> -> vector<8x32xf32>
    %c0_9 = arith.constant 0 : index
    %c0_10 = arith.constant 0 : index
    %10 = vector.load %arg5[%c0_9, %c0_10] : memref<1x32xf32, #tpu.memory_space<vmem>>, vector<1x32xf32>
    %11 = vector.broadcast %10 : vector<1x32xf32> to vector<8x32xf32>
    %12 = arith.addf %9, %11 : vector<8x32xf32>
    %cst_11 = arith.constant 0.000000e+00 : f32
    %13 = vector.broadcast %cst_11 : f32 to vector<8x32xf32>
    %14 = arith.maximumf %12, %13 : vector<8x32xf32>
    %c0_12 = arith.constant 0 : index
    %c0_13 = arith.constant 0 : index
    %15 = vector.load %arg6[%c0_12, %c0_13] : memref<32x16xf32, #tpu.memory_space<vmem>>, vector<32x16xf32>
    %cst_14 = arith.constant dense<0.000000e+00> : vector<8x16xf32>
    %16 = tpu.matmul %14, %15, %cst_14 {dimension_numbers = #tpu.dot_dimension_numbers<[1], [0], [0], [1], [0, 0, 1, 1], [], []>} : vector<8x32xf32>, vector<32x16xf32>, vector<8x16xf32> -> vector<8x16xf32>
    %c0_15 = arith.constant 0 : index
    %c0_16 = arith.constant 0 : index
    %17 = vector.load %arg7[%c0_15, %c0_16] : memref<1x16xf32, #tpu.memory_space<vmem>>, vector<1x16xf32>
    %18 = vector.broadcast %17 : vector<1x16xf32> to vector<8x16xf32>
    %19 = arith.addf %16, %18 : vector<8x16xf32>
    %c0_17 = arith.constant 0 : index
    %c0_18 = arith.constant 0 : index
    %20 = vector.load %arg8[%c0_17, %c0_18] : memref<8x16xf32, #tpu.memory_space<vmem>>, vector<8x16xf32>
    tpu.vector_store %arg8[%c0_17, %c0_18], %19 {strides = array<i32>} : memref<8x16xf32, #tpu.memory_space<vmem>>, vector<8x16xf32>,
    return
  }
  func.func @transform_0(%arg0: i32) -> (i32, i32) {
    %c0_i32 = arith.constant 0 : i32
    %c0_i32_0 = arith.constant 0 : i32
    return %arg0, %c0_i32 : i32, i32
  }
  func.func @transform_1(%arg0: i32) -> (i32, i32) {
    %c0_i32 = arith.constant 0 : i32
    %c0_i32_0 = arith.constant 0 : i32
    %c0_i32_1 = arith.constant 0 : i32
    return %c0_i32, %c0_i32_0 : i32, i32
  }
  func.func @transform_2(%arg0: i32) -> (i32, i32) {
    %c0_i32 = arith.constant 0 : i32
    %c0_i32_0 = arith.constant 0 : i32
    %c0_i32_1 = arith.constant 0 : i32
    return %c0_i32, %c0_i32_0 : i32, i32
  }
  func.func @transform_3(%arg0: i32) -> (i32, i32) {
    %c0_i32 = arith.constant 0 : i32
    %c0_i32_0 = arith.constant 0 : i32
    %c0_i32_1 = arith.constant 0 : i32
    return %c0_i32, %c0_i32_0 : i32, i32
  }
  func.func @transform_4(%arg0: i32) -> (i32, i32) {
    %c0_i32 = arith.constant 0 : i32
    %c0_i32_0 = arith.constant 0 : i32
    %c0_i32_1 = arith.constant 0 : i32
    return %c0_i32, %c0_i32_0 : i32, i32
  }
  func.func @transform_5(%arg0: i32) -> (i32, i32) {
    %c0_i32 = arith.constant 0 : i32
    %c0_i32_0 = arith.constant 0 : i32
    %c0_i32_1 = arith.constant 0 : i32
    return %c0_i32, %c0_i32_0 : i32, i32
  }
  func.func @transform_6(%arg0: i32) -> (i32, i32) {
    %c0_i32 = arith.constant 0 : i32
    %c0_i32_0 = arith.constant 0 : i32
    %c0_i32_1 = arith.constant 0 : i32
    return %c0_i32, %c0_i32_0 : i32, i32
  }
  func.func @transform_7(%arg0: i32) -> (i32, i32) {
    %c0_i32 = arith.constant 0 : i32
    %c0_i32_0 = arith.constant 0 : i32
    return %arg0, %c0_i32 : i32, i32
  }
}

</mosaic_0001>

<bundles_post_ra>
// kernel: reverse_forward_net.1
= control target key start
LH: loop header
LB: loop body
LE: loop exit
PB: predicated region body
PF: predicated region fallthrough
CT: control target
= control target key end

     0   :  { %12 = vsyncpa [#allocation3], 0  ;;  %s304_s0 = inlined_call_operand.hbm [shape: f32[8,16], index: 0, kind: input, shape index: {}]   ;;  %s305_s1 = inlined_call_operand.vmem [shape: f32[16,32], index: 1, kind: input, shape index: {}]   ;;  %s306_s2 = inlined_call_operand.vmem [shape: f32[1,32], index: 2, kind: input, shape index: {}]   ;;  %s307_s3 = inlined_call_operand.vmem [shape: f32[32,32], index: 3, kind: input, shape index: {}]   ;;  %s308_s4 = inlined_call_operand.vmem [shape: f32[1,32], index: 4, kind: input, shape index: {}]   ;;  %s309_s5 = inlined_call_operand.vmem [shape: f32[32,16], index: 5, kind: input, shape index: {}]   ;;  %s310_s6 = inlined_call_operand.vmem [shape: f32[1,16], index: 6, kind: input, shape index: {}]   ;;  %s311_s7 = inlined_call_operand.hbm [shape: f32[8,16], index: 7, kind: output, shape index: {}]  }
   0x1   :  { %13 = vsyncpa [#allocation4], 0  ;;  %s19_s26 = sshll.u32 %s304_s0, 4  ;;  %s215_s27 = smov [#allocation2]   ;;  %s20_s26 = int_to_ptr.hbm [resolvable:$true] %s19_s26 }
   0x2   :  { %s21_s28 = sshll.u32 %s215_s27, 4  ;;  %s22_s28 = int_to_ptr.vmem [resolvable:$true] %s21_s28 }
   0x3   :  { %24 = dma.hbm_to_vmem [thread:$0]  %s20_s26, 128, %s22_s28, [#allocation3]  }
   0x4   :  { %211 = dma.done.wait [#allocation3], 128  }
   0x5   :  { %212 = vsyncadd [#allocation3], 4294967168  ;;  %v43_v0 = vld [vmem:[%s305_s1 + $0x8] sm:$0xff]  ;;  %v42_v1 = vld [vmem:[%s305_s1] sm:$0xff]  ;;  %vm48_vm0 = vcmask 130048   ;;  %vm81_vm1 = vcmask 261120  }
   0x6   :  { %66 = vmatpush.msra.mxu0 %v43_v0  ;;  %v41_v2 = vld [vmem:[#allocation2] sm:$0xff]  ;;  %v76_v3 = vld [vmem:[%s307_s3 + $0x18] sm:$0xff]  ;;  %v75_v4 = vld [vmem:[%s307_s3 + $0x10] sm:$0xff]  ;;  %s216_s28 = smov [#allocation5]   ;;  %s145_s9 = sshll.u32 %s311_s7, 4  ;;  %s146_s9 = int_to_ptr.hbm [resolvable:$true] %s145_s9 }
   0x7   :  { %97 = vmatpush.msra.mxu1 %v76_v3  ;;  %v74_v5 = vld [vmem:[%s307_s3 + $0x8] sm:$0xff]  ;;  %v73_v6 = vld [vmem:[%s307_s3] sm:$0xff]  ;;  %v109_v7 = vld [vmem:[%s309_s5 + $0x18] sm:$0xff]  ;;  %s143_s29 = sshll.u32 %s216_s28, 4  ;;  %s144_s29 = int_to_ptr.vmem [resolvable:$true] %s143_s29 }
   0x8   :  { %67 = vmatpush.msra.mxu0 %v42_v1  ;;  %129 = vmatpush.msra.mxu2 %v109_v7  ;;  %v160_v8 = vld [vmem:[%s306_s2] ss:$0 sm:$0xff]  ;;  %v108_v12 = vld [vmem:[%s309_s5 + $0x10] sm:$0xff]  ;;  %v107_v13 = vld [vmem:[%s309_s5 + $0x8] sm:$0xff] }
   0x9   :  { %155 = vmatmul.msk.f32.vlgmr.msra.gmra.mxu0 %vm48_vm0, %v41_v2  ;;  %98 = vmatpush.msra.mxu1 %v75_v4  ;;  %v106_v14 = vld [vmem:[%s309_s5] sm:$0xff] }
   0xa   :  { %130 = vmatpush.msra.mxu2 %v108_v12  ;;  %v161_v15 = vld [vmem:[%s308_s4] ss:$0 sm:$0xff] }
   0xb   :  { %99 = vmatpush.msra.mxu1 %v74_v5  ;;  %v162_v19 = vld [vmem:[%s310_s6] ss:$0 sm:$0xff] }
   0xc   :  { %131 = vmatpush.msra.mxu2 %v107_v13 }
   0xd   :  { %100 = vmatpush.msra.mxu1 %v73_v6 }
   0xe   :  { %132 = vmatpush.msra.mxu2 %v106_v14 }
  0x86   :  { %v69_v9 = vpop.f32.mrf.mxu0 }
  0x87   :  { %v70_v10 = vadd.f32 %v160_v8, %v69_v9 }
  0x89   :  { %v72_v11 = vmax.f32 %v70_v10, 0.0 }
  0x8b   :  { %156 = vmatmul.msk.f32.vlgmr.msra.gmra.mxu1 %vm81_vm1, %v72_v11 }
 0x108   :  { %v102_v16 = vpop.f32.mrf.mxu1 }
 0x109   :  { %v103_v17 = vadd.f32 %v161_v15, %v102_v16 }
 0x10b   :  { %v105_v18 = vmax.f32 %v103_v17, 0.0 }
 0x10d   :  { %157 = vmatmul.msk.f32.vlgmr.msra.gmra.mxu2 %vm81_vm1, %v105_v18 }
 0x190   :  { %v134_v20 = vpop.f32.mrf.mxu2 }
 0x191   :  { %v135_v21 = vadd.f32 %v162_v19, %v134_v20 }
 0x193   :  { %137 = vst.msk [vmem:[#allocation5] sm:$0xff] %vm48_vm0, %v135_v21 }
 0x194   :  { %148 = dma.vmem_to_hbm [thread:$0]  %s144_s29, 128, %s146_s9, [#allocation4]  }
 0x195   :  { %213 = dma.done.wait [#allocation4], 128  }
 0x196   :  { %214 = vsyncadd [#allocation4], 4294967168 }
 0x197   :  { %153 = vsyncpa [#allocation3], 1 }
 0x198   :  { %154 = vsyncpa [#allocation4], 1 }

</bundles_post_ra>
